<compile_context>
chip_gen: v7x
topology: tpu7x:2x2x1
jax: 0.10.0
libtpu: 0.0.40
codegen_flags: <defaults>
</compile_context>

<pallas_src>
import functools

import jax
import jax.numpy as jnp
from jax.experimental import pallas as pl
from jax.experimental.pallas import tpu as pltpu

_VMEM = pl.BlockSpec(memory_space=pltpu.MemorySpace.VMEM)
_VMEM_LIMIT = 32 * 1024 * 1024


def _round_up(x, m):
    return ((x + m - 1) // m) * m


def _choose_tc(T, B, G, *, bytes_per=2, budget=8 * 1024 * 1024):
    """T-chunk length for the recurrences: full T when short, otherwise a
    multiple of 8 sized so the double-buffered bf16 gate block stays within
    ~budget bytes of VMEM (v7x-safe)."""
    if T <= 16:
        return T
    tc = budget // (2 * B * G * bytes_per)
    tc = max(8, min(64, (tc // 8) * 8))
    return min(tc, _round_up(T, 8))


# ----------------------------------------------------------------------------
# Kernel 1: tiled (optionally batched) matmul + bias epilogue.
#   bf16 operands on the MXU, f32 accumulation.  Used for:
#     * both encoder input projections (batched, leading axis = 2)
#     * decoder input projection
#     * decoder HxV output projection (f32 output, accumulate into o_ref)
# ----------------------------------------------------------------------------
def _matmul_acc_kernel(a_ref, b_ref, bias_ref, o_ref, acc_ref):
    @pl.when(pl.program_id(3) == 0)
    def _():
        acc_ref[...] = jnp.zeros_like(acc_ref)

    acc_ref[...] += jnp.dot(a_ref[0], b_ref[0],
                            preferred_element_type=jnp.float32)

    @pl.when(pl.program_id(3) == pl.num_programs(3) - 1)
    def _():
        o_ref[0] = (acc_ref[...] + bias_ref[0]).astype(o_ref.dtype)


def _matmul_f32_kernel(a_ref, b_ref, bias_ref, o_ref):
    # f32 output: accumulate directly into the resident output block.
    @pl.when(pl.program_id(3) == 0)
    def _():
        o_ref[...] = jnp.zeros_like(o_ref)

    o_ref[0] += jnp.dot(a_ref[0], b_ref[0],
                        preferred_element_type=jnp.float32)

    @pl.when(pl.program_id(3) == pl.num_programs(3) - 1)
    def _():
        o_ref[0] += bias_ref[0]


def pallas_matmul(a, b, bias, *, out_dtype=jnp.bfloat16,
                  tm=256, tk=512, tn=512):
    """(G?, M, K) @ (G?, K, N) + bias(G?, 1, N) -> (G?, M, N) in out_dtype."""
    squeeze = (a.ndim == 2)
    if squeeze:
        a, b, bias = a[None], b[None], bias[None]
    Gn, M, K = a.shape
    _, _, N = b.shape

    def tile(dim, t):
        # single full-extent block when small (any size allowed), else a
        # 128/8-aligned tile and pad.
        return (dim, dim) if dim <= t else (t, _round_up(dim, t))

    bm, Mp = tile(M, tm)
    bk, Kp = tile(K, tk)
    bn, Np = tile(N, tn)

    a_p = a if a.dtype == jnp.bfloat16 else a.astype(jnp.bfloat16)
    b_p = b if b.dtype == jnp.bfloat16 else b.astype(jnp.bfloat16)
    bias_p = bias.astype(jnp.float32)
    if (Mp, Kp) != (M, K):
        a_p = jnp.pad(a_p, ((0, 0), (0, Mp - M), (0, Kp - K)))
    if (Kp, Np) != (K, N):
        b_p = jnp.pad(b_p, ((0, 0), (0, Kp - K), (0, Np - N)))
    if Np != N:
        bias_p = jnp.pad(bias_p, ((0, 0), (0, 0), (0, Np - N)))

    if out_dtype == jnp.float32:
        kernel, scratch = _matmul_f32_kernel, []
    else:
        kernel, scratch = _matmul_acc_kernel, [pltpu.VMEM((bm, bn), jnp.float32)]

    out = pl.pallas_call(
        kernel,
        out_shape=jax.ShapeDtypeStruct((Gn, Mp, Np), out_dtype),
        grid_spec=pltpu.PrefetchScalarGridSpec(
            num_scalar_prefetch=0,
            grid=(Gn, Mp // bm, Np // bn, Kp // bk),
            in_specs=[pl.BlockSpec((1, bm, bk), lambda g, i, j, k: (g, i, k)),
                      pl.BlockSpec((1, bk, bn), lambda g, i, j, k: (g, k, j)),
                      pl.BlockSpec((1, 1, bn), lambda g, i, j, k: (g, 0, j))],
            out_specs=pl.BlockSpec((1, bm, bn), lambda g, i, j, k: (g, i, j)),
            scratch_shapes=scratch),
        compiler_params=pltpu.CompilerParams(
            dimension_semantics=("parallel", "parallel", "parallel",
                                 "arbitrary"),
            vmem_limit_bytes=_VMEM_LIMIT),
    )(a_p, b_p, bias_p)
    if (Mp, Np) != (M, N):
        out = out[:, :M, :N]
    if squeeze:
        out = out[0]
    return out


# ----------------------------------------------------------------------------
# Kernel 2: dual packed-sequence LSTM encoder recurrence.
#   Grid = (2 encoders ["parallel" -> both v7x TensorCores], T-chunks
#   ["arbitrary", h/c carried in VMEM scratch]).  Gates (bf16, (B,T,4Hp)
#   batch-major) were precomputed by pallas_matmul; per-step length masking
#   reproduces pack_padded_sequence final-state semantics; fully padded chunks
#   are skipped via the scalar-prefetched per-encoder max length.
# ----------------------------------------------------------------------------
def _dual_enc_kernel(max_len_ref, len_ref, gates_ref, w_hh_ref, h_out_ref,
                     h_sc, c_sc, *, tc, hp):
    e = pl.program_id(0)
    t0 = pl.program_id(1) * tc

    @pl.when(pl.program_id(1) == 0)
    def _():
        h_sc[...] = jnp.zeros_like(h_sc)
        c_sc[...] = jnp.zeros_like(c_sc)

    @pl.when(t0 < max_len_ref[e])          # skip fully-padded chunks
    def _():
        w_hh = w_hh_ref[0]                 # (Hp, 4Hp) bf16, loop invariant
        lens = len_ref[0]                  # (B, 1) int32
        h = h_sc[...]
        c = c_sc[...]
        for i in range(tc):                # static unroll; static slices only
            g = gates_ref[0, :, i, :].astype(jnp.float32)
            g = g + jnp.dot(h.astype(jnp.bfloat16), w_hh,
                            preferred_element_type=jnp.float32)
            i_g = jax.nn.sigmoid(g[:, 0 * hp:1 * hp])      # lane-aligned
            f_g = jax.nn.sigmoid(g[:, 1 * hp:2 * hp])
            g_g = jnp.tanh(g[:, 2 * hp:3 * hp])
            o_g = jax.nn.sigmoid(g[:, 3 * hp:4 * hp])
            c_new = f_g * c + i_g * g_g
            h_new = o_g * jnp.tanh(c_new)
            m = (t0 + i) < lens                            # (B, 1) mask
            h = jnp.where(m, h_new, h)
            c = jnp.where(m, c_new, c)
        h_sc[...] = h
        c_sc[...] = c

    @pl.when(pl.program_id(1) == pl.num_programs(1) - 1)
    def _():
        h_out_ref[0] = h_sc[...]


def dual_lstm_encode(max_lens, lengths, gates, w_hh, *, hp, tc):
    NE, B, Tpad, G = gates.shape
    kernel = functools.partial(_dual_enc_kernel, tc=tc, hp=hp)
    return pl.pallas_call(
        kernel,
        out_shape=jax.ShapeDtypeStruct((NE, B, hp), jnp.float32),
        grid_spec=pltpu.PrefetchScalarGridSpec(
            num_scalar_prefetch=1,
            grid=(NE, Tpad // tc),
            in_specs=[pl.BlockSpec((1, B, 1), lambda e, t, ml: (e, 0, 0)),
                      pl.BlockSpec((1, B, tc, G), lambda e, t, ml: (e, 0, t, 0)),
                      pl.BlockSpec((1, hp, G), lambda e, t, ml: (e, 0, 0))],
            out_specs=pl.BlockSpec((1, B, hp), lambda e, t, ml: (e, 0, 0)),
            scratch_shapes=[pltpu.VMEM((B, hp), jnp.float32),
                            pltpu.VMEM((B, hp), jnp.float32)]),
        compiler_params=pltpu.CompilerParams(
            dimension_semantics=("parallel", "arbitrary"),
            vmem_limit_bytes=_VMEM_LIMIT),
    )(max_lens, lengths, gates, w_hh)


# ----------------------------------------------------------------------------
# Kernel 3: decoder LSTMCell recurrence (input gates precomputed, bf16).
#   Emits hidden states directly in (B, T, Hp) bf16 (lane-dense, batch-major);
#   the HxV output projection is a separate tiled matmul.
# ----------------------------------------------------------------------------
def _lstm_dec_kernel(gates_ref, h0_ref, c0_ref, w_hh_ref, hs_ref,
                     h_sc, c_sc, *, tc, hp):
    @pl.when(pl.program_id(0) == 0)
    def _():
        h_sc[...] = h0_ref[...]
        c_sc[...] = c0_ref[...]

    w_hh = w_hh_ref[...]                   # (Hp, 4Hp) bf16, loop invariant
    h = h_sc[...]
    c = c_sc[...]
    for i in range(tc):                    # static unroll; static slices only
        g = gates_ref[:, i, :].astype(jnp.float32) + jnp.dot(
            h.astype(jnp.bfloat16), w_hh, preferred_element_type=jnp.float32)
        i_g = jax.nn.sigmoid(g[:, 0 * hp:1 * hp])
        f_g = jax.nn.sigmoid(g[:, 1 * hp:2 * hp])
        g_g = jnp.tanh(g[:, 2 * hp:3 * hp])
        o_g = jax.nn.sigmoid(g[:, 3 * hp:4 * hp])
        c = f_g * c + i_g * g_g
        h = o_g * jnp.tanh(c)
        hs_ref[:, i, :] = h.astype(hs_ref.dtype)
    h_sc[...] = h
    c_sc[...] = c


def rnn_decode(gates, h0, c0, w_hh, *, hp, tc):
    B, Tpad, G = gates.shape
    kernel = functools.partial(_lstm_dec_kernel, tc=tc, hp=hp)
    return pl.pallas_call(
        kernel,
        out_shape=jax.ShapeDtypeStruct((B, Tpad, hp), jnp.bfloat16),
        grid_spec=pltpu.PrefetchScalarGridSpec(
            num_scalar_prefetch=0,
            grid=(Tpad // tc,),
            in_specs=[pl.BlockSpec((B, tc, G), lambda t: (0, t, 0)),
                      pl.BlockSpec((B, hp), lambda t: (0, 0)),
                      pl.BlockSpec((B, hp), lambda t: (0, 0)),
                      pl.BlockSpec((hp, G), lambda t: (0, 0))],
            out_specs=pl.BlockSpec((B, tc, hp), lambda t: (0, t, 0)),
            scratch_shapes=[pltpu.VMEM((B, hp), jnp.float32),
                            pltpu.VMEM((B, hp), jnp.float32)]),
        compiler_params=pltpu.CompilerParams(
            dimension_semantics=("arbitrary",),
            vmem_limit_bytes=_VMEM_LIMIT),
    )(gates, h0, c0, w_hh)


# ----------------------------------------------------------------------------
# Kernel 4: EmbeddingCompressor, fully fused.
#   linear -> softplus -> log -> PER-CODEBOOK gumbel softmax (static M loop,
#   per-codebook max shift -> no underflow/NaN) -> probs @ codebook
#   (accumulated per codebook, all VMEM-resident, single program).
# ----------------------------------------------------------------------------
def _compressor_kernel(x_ref, w1_ref, b1_ref, g_ref, cb_ref, out_ref,
                       *, M, K, inv_tau):
    hs = jax.nn.softplus(
        jnp.dot(x_ref[...].astype(jnp.bfloat16), w1_ref[...],
                preferred_element_type=jnp.float32) + b1_ref[...])
    y = (jnp.log(hs + 1e-8) + g_ref[...]) * inv_tau          # (B, M*K) f32
    acc = jnp.zeros(out_ref.shape, jnp.float32)
    for m in range(M):                                        # static; tiny
        ym = y[:, m * K:(m + 1) * K]                          # (B, K)
        ym = ym - jnp.max(ym, axis=-1, keepdims=True)         # per-codebook max
        em = jnp.exp(ym)
        # denom >= 1 here, so approx reciprocal is safe (probs sum to ~1; note
        # the EUP approximation if these probabilities ever feed a loss).
        pm = em * pl.reciprocal(jnp.sum(em, axis=-1, keepdims=True),
                                approx=True)
        acc = acc + jnp.dot(pm.astype(jnp.bfloat16),
                            cb_ref[m * K:(m + 1) * K, :],
                            preferred_element_type=jnp.float32)
    out_ref[...] = acc


def embedding_compressor(x, w1, b1, gumbel, codebook, *, M, K, tau):
    B = x.shape[0]
    Hp = codebook.shape[1]
    kernel = functools.partial(_compressor_kernel, M=M, K=K, inv_tau=1.0 / tau)
    return pl.pallas_call(
        kernel,
        out_shape=jax.ShapeDtypeStruct((B, Hp), jnp.float32),
        in_specs=[_VMEM] * 5,
        out_specs=_VMEM,
        compiler_params=pltpu.CompilerParams(vmem_limit_bytes=_VMEM_LIMIT),
    )(x, w1, b1, gumbel, codebook)


# ----------------------------------------------------------------------------
# Parameters.  Per-gate width padded to Hp = round_up(H, 128) so gate slices
# are lane-aligned; padded rows/cols are zero so padded lanes of h/c stay zero
# and never affect real outputs.  bf16 weights for MXU operands, f32 biases.
# ----------------------------------------------------------------------------
def init_params(key, n_vocab_code, n_vocab_source, embed_size, hidden_size,
                n_codebook, n_centroid):
    H, E, M, K = hidden_size, embed_size, n_codebook, n_centroid
    Hp = _round_up(H, 128)
    G = 4 * Hp
    ks = jax.random.split(key, 16)

    def u(k, shape, scale=0.1):
        return jax.random.uniform(k, shape, jnp.float32, -scale, scale)

    def gate_cols(w):        # (din, 4H) -> (din, 4Hp), each gate padded to Hp
        din = w.shape[0]
        w = w.reshape(din, 4, H)
        return jnp.pad(w, ((0, 0), (0, 0), (0, Hp - H))).reshape(din, G)

    def w_ih(k):             # (E, 4Hp) bf16
        return gate_cols(u(k, (E, 4 * H))).astype(jnp.bfloat16)

    def w_hh(k):             # (Hp, 4Hp) bf16, rows H:Hp zero
        w = jnp.pad(u(k, (H, 4 * H)), ((0, Hp - H), (0, 0)))
        return gate_cols(w).astype(jnp.bfloat16)

    def bias(k):             # (1, 4Hp) f32, b_ih + b_hh folded together
        return gate_cols(u(k, (1, 4 * H), scale=0.2))

    def emb(k, n_vocab):     # padding_idx=0 row zeroed
        w = jax.random.normal(k, (n_vocab, E), jnp.float32) * 0.1
        return w.at[0].set(0.0).astype(jnp.bfloat16)

    # Code + source embedding tables concatenated so one gather produces the
    # stacked encoder inputs (source ids are offset by n_vocab_code).
    enc_emb = jnp.concatenate([emb(ks[0], n_vocab_code),
                               emb(ks[1], n_vocab_source)], axis=0)

    params = {
        # the two encoders, stacked on a leading axis (0 = code, 1 = source)
        "enc_emb": enc_emb,                                    # (Vc+Vs, E) bf16
        "enc_w_ih": jnp.stack([w_ih(ks[2]), w_ih(ks[3])]),     # (2, E, 4Hp)
        "enc_w_hh": jnp.stack([w_hh(ks[4]), w_hh(ks[5])]),     # (2, Hp, 4Hp)
        "enc_b": jnp.stack([bias(ks[6]), bias(ks[7])]),        # (2, 1, 4Hp) f32
        # decoder
        "dec_emb": emb(ks[8], n_vocab_code),
        "dec_w_ih": w_ih(ks[9]),
        "dec_w_hh": w_hh(ks[10]),
        "dec_b": bias(ks[11]),
        "dec_w_out": jnp.pad(u(ks[12], (H, n_vocab_code)),
                             ((0, Hp - H), (0, 0))).astype(jnp.bfloat16),
        "dec_b_out": u(ks[13], (1, n_vocab_code)),
        # embedding compressor
        "cmp_w1": jnp.pad(u(ks[14], (H, M * K)),
                          ((0, Hp - H), (0, 0))).astype(jnp.bfloat16),
        "cmp_b1": jnp.zeros((1, M * K), jnp.float32),
        "codebook": jnp.pad(
            jax.random.uniform(ks[15], (M * K, H), jnp.float32, 0.0, 1.0),
            ((0, 0), (0, Hp - H))).astype(jnp.bfloat16),
    }
    return params


# ----------------------------------------------------------------------------
# Full EncoderDecoder forward
# ----------------------------------------------------------------------------
def encoder_decoder_forward(params, cfg, pos, pos_len, src, src_len, gumbel_key):
    M, K, tau = cfg["M"], cfg["K"], cfg["tau"]
    n_vocab_code = cfg["n_vocab_code"]
    B, Tp = pos.shape
    Ts = src.shape[1]
    Hp, G = params["dec_w_hh"].shape
    E = params["dec_w_ih"].shape[0]

    # --- both encoders at once (code over pos[:,1:], source over src) -------
    Tc = Tp - 1
    Tenc = max(Tc, Ts)
    tc_e = _choose_tc(Tenc, B, G)
    Tenc_pad = _round_up(Tenc, tc_e)

    def pad_ids(ids, T):      # pad with id 0 (zero embedding row)
        return jnp.pad(ids, ((0, 0), (0, Tenc_pad - T)))

    ids = jnp.stack([pad_ids(pos[:, 1:], Tc),
                     pad_ids(src, Ts) + n_vocab_code])         # (2, B, Tenc_pad)
    enc_ex = jnp.take(params["enc_emb"], ids, axis=0)          # (2,B,Tenc_pad,E)

    # hoisted input projections: one batched bf16 MXU matmul, bias folded in
    enc_gates = pallas_matmul(enc_ex.reshape(2, B * Tenc_pad, E),
                              params["enc_w_ih"], params["enc_b"],
                              out_dtype=jnp.bfloat16
                              ).reshape(2, B, Tenc_pad, G)

    enc_lens = jnp.stack([pos_len - 1, src_len]).astype(jnp.int32)   # (2, B)
    enc_max = jnp.max(enc_lens, axis=1).astype(jnp.int32)            # (2,)

    enc_h = dual_lstm_encode(enc_max, enc_lens.reshape(2, B, 1),
                             enc_gates, params["enc_w_hh"],
                             hp=Hp, tc=tc_e)                   # (2, B, Hp) f32
    hs_code, hs_src = enc_h[0], enc_h[1]

    # --- embedding compressor (gumbel noise drawn host-side) ---------------
    gumbel = jax.random.gumbel(gumbel_key, (B, M * K), jnp.float32)
    code_sum = embedding_compressor(hs_code, params["cmp_w1"],
                                    params["cmp_b1"], gumbel,
                                    params["codebook"], M=M, K=K, tau=tau)

    # per-step length masking already gives pack_padded_sequence final-state
    # semantics for unsorted lengths, so the torch sort / scatter-unsort of the
    # source batch is unnecessary.
    dec_h0 = hs_src + code_sum
    dec_c0 = jnp.zeros_like(dec_h0)

    # --- decoder over the full pos sequence ---------------------------------
    tc_d = _choose_tc(Tp, B, G)
    Tdec_pad = _round_up(Tp, tc_d)
    dec_ids = jnp.pad(pos, ((0, 0), (0, Tdec_pad - Tp)))
    dec_ex = jnp.take(params["dec_emb"], dec_ids, axis=0)      # (B, Tdec_pad, E)
    dec_gates = pallas_matmul(dec_ex.reshape(B * Tdec_pad, E),
                              params["dec_w_ih"], params["dec_b"],
                              out_dtype=jnp.bfloat16
                              ).reshape(B, Tdec_pad, G)

    hs = rnn_decode(dec_gates, dec_h0, dec_c0, params["dec_w_hh"],
                    hp=Hp, tc=tc_d)                            # (B,Tdec_pad,Hp) bf16
    if Tdec_pad != Tp:
        hs = hs[:, :Tp, :]                                     # drop padded steps

    # torch row order: stack(hs_list, dim=1).view(-1, H) -> (b, t); the (B,T,Hp)
    # bf16 layout makes this a plain reshape feeding the bf16 MXU directly.
    logits = pallas_matmul(hs.reshape(B * Tp, Hp), params["dec_w_out"],
                           params["dec_b_out"], out_dtype=jnp.float32)
    return logits


if __name__ == "__main__":
    # small config
    n_vocab_code, n_vocab_source = 50, 60
    embed_size, hidden_size = 16, 32
    n_codebook, n_centroid = 4, 8
    cfg = {"M": n_codebook, "K": n_centroid, "tau": 1.0,
           "n_vocab_code": n_vocab_code}

    B, Tp, Ts = 2, 8, 6

    root = jax.random.PRNGKey(0)
    k_param, k_pos, k_src, k_gumbel = jax.random.split(root, 4)

    params = init_params(k_param, n_vocab_code, n_vocab_source,
                         embed_size, hidden_size, n_codebook, n_centroid)

    pos = jax.random.randint(k_pos, (B, Tp), 1, n_vocab_code, jnp.int32)
    pos_len = jnp.array([8, 6], jnp.int32)        # sorted desc (pack requirement)
    src = jax.random.randint(k_src, (B, Ts), 1, n_vocab_source, jnp.int32)
    src_len = jnp.array([4, 6], jnp.int32)        # unsorted: mask handles it

    logits = encoder_decoder_forward(params, cfg, pos, pos_len, src, src_len,
                                     k_gumbel)
    logits = jax.block_until_ready(logits)
    assert logits.shape == (B * Tp, n_vocab_code), logits.shape
    assert bool(jnp.all(jnp.isfinite(logits)))
    print("KERNEL_OK")
</pallas_src>

<mosaic_0001>
module attributes {stable_mosaic.version = 11 : i64} {
  func.func @_matmul_acc_kernel(%arg0: i32, %arg1: i32, %arg2: i32, %arg3: i32, %arg4: memref<1x14x16xbf16, #tpu.memory_space<vmem>>, %arg5: memref<1x16x512xbf16, #tpu.memory_space<vmem>>, %arg6: memref<1x1x512xf32, #tpu.memory_space<vmem>>, %arg7: memref<1x14x512xbf16, #tpu.memory_space<vmem>>, %arg8: memref<14x512xf32, #tpu.memory_space<vmem>>) attributes {dimension_semantics = [#tpu.dimension_semantics<parallel>, #tpu.dimension_semantics<parallel>, #tpu.dimension_semantics<parallel>, #tpu.dimension_semantics<arbitrary>], iteration_bounds = array<i64: 2, 1, 1, 1>, scalar_prefetch = 0 : i64, scratch_operands = 1 : i64, tpu.core_type = #tpu.core_type<tc>, window_params = [{transform_indices = @transform_0, window_bounds = array<i64: 1, 14, 16>}, {transform_indices = @transform_1, window_bounds = array<i64: 1, 16, 512>}, {transform_indices = @transform_2, window_bounds = array<i64: 1, 1, 512>}, {transform_indices = @transform_3, window_bounds = array<i64: 1, 14, 512>}]} {
    %c0_i32 = arith.constant 0 : i32
    %0 = arith.cmpi eq, %arg3, %c0_i32 : i32
    %1 = arith.extui %0 : i1 to i32
    %c0_i32_0 = arith.constant 0 : i32
    %2 = arith.cmpi ne, %1, %c0_i32_0 : i32
    scf.if %2 {
      %cst_12 = arith.constant 0.000000e+00 : f32
      %14 = vector.broadcast %cst_12 : f32 to vector<14x512xf32>
      %c0_13 = arith.constant 0 : index
      %c0_14 = arith.constant 0 : index
      %15 = vector.load %arg8[%c0_13, %c0_14] : memref<14x512xf32, #tpu.memory_space<vmem>>, vector<14x512xf32>
      tpu.vector_store %arg8[%c0_13, %c0_14], %14 {strides = array<i32>} : memref<14x512xf32, #tpu.memory_space<vmem>>, vector<14x512xf32>,
    } else {
    }
    %c0 = arith.constant 0 : index
    %c0_1 = arith.constant 0 : index
    %3 = vector.load %arg8[%c0, %c0_1] : memref<14x512xf32, #tpu.memory_space<vmem>>, vector<14x512xf32>
    %c0_2 = arith.constant 0 : index
    %c0_3 = arith.constant 0 : index
    %c0_4 = arith.constant 0 : index
    %4 = vector.load %arg4[%c0_2, %c0_3, %c0_4] : memref<1x14x16xbf16, #tpu.memory_space<vmem>>, vector<1x14x16xbf16>
    %5 = vector.shape_cast %4 : vector<1x14x16xbf16> to vector<14x16xbf16>
    %c0_5 = arith.constant 0 : index
    %c0_6 = arith.constant 0 : index
    %c0_7 = arith.constant 0 : index
    %6 = vector.load %arg5[%c0_5, %c0_6, %c0_7] : memref<1x16x512xbf16, #tpu.memory_space<vmem>>, vector<1x16x512xbf16>
    %7 = vector.shape_cast %6 : vector<1x16x512xbf16> to vector<16x512xbf16>
    %cst = arith.constant dense<0.000000e+00> : vector<14x512xf32>
    %8 = tpu.matmul %5, %7, %cst {dimension_numbers = #tpu.dot_dimension_numbers<[1], [0], [0], [1], [0, 0, 1, 1], [], []>} : vector<14x16xbf16>, vector<16x512xbf16>, vector<14x512xf32> -> vector<14x512xf32>
    %9 = arith.addf %3, %8 : vector<14x512xf32>
    %c0_8 = arith.constant 0 : index
    %c0_9 = arith.constant 0 : index
    %10 = vector.load %arg8[%c0_8, %c0_9] : memref<14x512xf32, #tpu.memory_space<vmem>>, vector<14x512xf32>
    tpu.vector_store %arg8[%c0_8, %c0_9], %9 {strides = array<i32>} : memref<14x512xf32, #tpu.memory_space<vmem>>, vector<14x512xf32>,
    %c0_i32_10 = arith.constant 0 : i32
    %11 = arith.cmpi eq, %arg3, %c0_i32_10 : i32
    %12 = arith.extui %11 : i1 to i32
    %c0_i32_11 = arith.constant 0 : i32
    %13 = arith.cmpi ne, %12, %c0_i32_11 : i32
    scf.if %13 {
      %c0_12 = arith.constant 0 : index
      %c0_13 = arith.constant 0 : index
      %14 = vector.load %arg8[%c0_12, %c0_13] : memref<14x512xf32, #tpu.memory_space<vmem>>, vector<14x512xf32>
      %c0_14 = arith.constant 0 : index
      %c0_15 = arith.constant 0 : index
      %c0_16 = arith.constant 0 : index
      %15 = vector.load %arg6[%c0_14, %c0_15, %c0_16] : memref<1x1x512xf32, #tpu.memory_space<vmem>>, vector<1x1x512xf32>
      %16 = vector.shape_cast %15 : vector<1x1x512xf32> to vector<1x512xf32>
      %17 = vector.broadcast %16 : vector<1x512xf32> to vector<14x512xf32>
      %18 = arith.addf %14, %17 : vector<14x512xf32>
      %19 = arith.truncf %18 : vector<14x512xf32> to vector<14x512xbf16>
      %c0_17 = arith.constant 0 : index
      %c0_18 = arith.constant 0 : index
      %c0_19 = arith.constant 0 : index
      %20 = vector.load %arg7[%c0_17, %c0_18, %c0_19] : memref<1x14x512xbf16, #tpu.memory_space<vmem>>, vector<1x14x512xbf16>
      %21 = vector.shape_cast %20 : vector<1x14x512xbf16> to vector<14x512xbf16>
      %22 = vector.shape_cast %19 : vector<14x512xbf16> to vector<1x14x512xbf16>
      tpu.vector_store %arg7[%c0_17, %c0_18, %c0_19], %22 {strides = array<i32>} : memref<1x14x512xbf16, #tpu.memory_space<vmem>>, vector<1x14x512xbf16>,
    } else {
    }
    return
  }
  func.func @transform_0(%arg0: i32, %arg1: i32, %arg2: i32, %arg3: i32) -> (i32, i32, i32) {
    %c0_i32 = arith.constant 0 : i32
    return %arg0, %arg1, %arg3 : i32, i32, i32
  }
  func.func @transform_1(%arg0: i32, %arg1: i32, %arg2: i32, %arg3: i32) -> (i32, i32, i32) {
    %c0_i32 = arith.constant 0 : i32
    return %arg0, %arg3, %arg2 : i32, i32, i32
  }
  func.func @transform_2(%arg0: i32, %arg1: i32, %arg2: i32, %arg3: i32) -> (i32, i32, i32) {
    %c0_i32 = arith.constant 0 : i32
    %c0_i32_0 = arith.constant 0 : i32
    return %arg0, %c0_i32, %arg2 : i32, i32, i32
  }
  func.func @transform_3(%arg0: i32, %arg1: i32, %arg2: i32, %arg3: i32) -> (i32, i32, i32) {
    %c0_i32 = arith.constant 0 : i32
    return %arg0, %arg1, %arg2 : i32, i32, i32
  }
}

</mosaic_0001>

<bundles_post_ra>
// kernel: tpu_custom_call.1
= control target key start
LH: loop header
LB: loop body
LE: loop exit
PB: predicated region body
PF: predicated region fallthrough
CT: control target
= control target key end

     0   :  { %8 = vsyncpa [#allocation4], 0  ;;  %s1059_s0 = inlined_call_operand.vmem [shape: bf16[2,14,16], index: 0, kind: input, shape index: {}]   ;;  %s1060_s1 = inlined_call_operand.hbm [shape: bf16[2,16,512], index: 1, kind: input, shape index: {}]   ;;  %s1061_s2 = inlined_call_operand.vmem [shape: f32[2,1,512], index: 2, kind: input, shape index: {}]   ;;  %s1062_s3 = inlined_call_operand.vmem [shape: bf16[2,14,512], index: 3, kind: output, shape index: {}]  }
   0x1   :  { %10 = vsyncpa [#allocation4 + $0x1], 0  ;;  %s924_s12 = smov 0   ;;  %s926_s13 = smov 0  }
   0x2   :  { %s928_s14 = smov 0   ;;  %s930_s15 = smov 0  }
   0x3   :  { %s932_s16 = smov 0   ;;  %s934_s17 = smov 0  }
   0x4 LB: > { %s717_s18 = sadd.s32 4294967295, %s897_s17   ;;  %s42_s19 = sadd.s32 1, %s893_s16  ;;  %s897_s17 = sphi %s934_s17, %s16_s17   ;;  %s893_s16 = sphi %s932_s16, %s1070_s16   ;;  %s889_s15 = sphi %s930_s15, %s1069_s15   ;;  %s885_s14 = sphi %s928_s14, %s1068_s14   ;;  %s881_s13 = sphi %s926_s13, %s1067_s13   ;;  %s877_s12 = sphi %s924_s12, %s1066_s12  }
   0x5   : > { %p44_p0 = scmp.ge.s32.totalorder %s42_s19, 2  ;;  %s83_s20 = sadd.s32 1, %s885_s14 }
   0x6   : > { %p90_p1 = scmp.ne.s32.totalorder %s885_s14, %s881_s13  ;;  %p91_p2 = scmp.eq.s32.totalorder %s897_s17, 0 }
   0x7   : > { %s1072_s19 = smov (%p44_p0, %s42_s19), 0  ;;  %p96_p4 = scmp.ne.s32.totalorder %s881_s13, %s877_s12 }
   0x8   : > { %p960_p3 = por %p91_p2, %p90_p1  ;;  %s76_s22 = ssub.s32 %s893_s16, %s1072_s19 }
   0x9   : > { %p97_p5 = scmp.eq.s32.totalorder %s717_s18, 0  ;;  %p81_p6 = scmp.eq.s32.totalorder %s76_s22, 0 }
   0xa   : > { %p757_p8 = scmp.lt.s32.totalorder %s897_s17, 2  ;;  %s194_s25 = sand.u32 1, %s885_s14  }
   0xb   : > { %p967_p7 = por %p97_p5, %p96_p4  ;;  %s744_s26 = sshll.u32 %s893_s16, 9 }
   0xc   : > { %s973_s24 = scalar_select %p81_p6, %s885_s14, %s83_s20  }
   0xd   : > { %s721_s27 = sshll.u32 %s194_s25, 5  ;;  %s980_s30 = scalar_lea.hbm %s1060_s1, %s744_s26 }
   0xe   : > { %s198_s4 = scalar_lea.vmem [#allocation3], %s721_s27  ;;  %p984_p9 = pnand %p757_p8, %p960_p3 }
   0xf   : > { %s210_s5 = sshll.u32 %s198_s4, 4  ;;  %s990_s7 = scalar_lea.sflag [#allocation4], %s194_s25  ;;  %s988_s5 = int_to_ptr.vmem [resolvable:$true] %s210_s5 }
  0x10   : > { %s817_s8 = scalar_lea.hbm %s980_s30, 512  ;;  %p819_p11 = pneg %p984_p9 }
  0x11   : > { %p818_p10 = scmp.ne.s32.totalorder %s980_s30, %s817_s8  ;;  %s822_s11 = scalar_lea.hbm %s1060_s1, 1024 }
  0x12   : > { %p823_p0 = scmp.lt.u32.totalorder %s980_s30, %s1060_s1  ;;  %p824_p1 = scmp.lt.u32.totalorder %s822_s11, %s817_s8 }
  0x13   : > { %p820_p12 = pnand %p819_p11, %p818_p10  ;;  %p826_p3 = scmp.lt.u32.totalorder %s817_s8, %s980_s30 }
  0x14   : > { %p825_p2 = por %p824_p1, %p823_p0 }
  0x15   : > { %p821_p13 = pneg %p820_p12 }
  0x16   : > { %p827_p4 = por %p826_p3, %p825_p2 }
  0x18   : > { %p828_p5 = pnand %p827_p4, %p821_p13 }
  0x1a   : > { %831 = shalt.err (!%p828_p5)
}
  0x1b   : > { %s832_s20 = scalar_lea.vmem %s988_s5, 512  ;;  %s899_s21 = smov [#allocation3]  }
  0x1c   : > { %p833_p6 = scmp.ne.s32.totalorder %s988_s5, %s832_s20  ;;  %s837_s22 = sshll.u32 %s899_s21, 4  ;;  %s838_s22 = int_to_ptr.vmem [resolvable:$false] %s837_s22 }
  0x1d   : > { %s839_s25 = scalar_lea.vmem %s838_s22, 1024  ;;  %p840_p12 = scmp.lt.s32.totalorder %s988_s5, %s838_s22 }
  0x1e   : > { %p835_p8 = pnand %p833_p6, %p819_p11  ;;  %p841_p0 = scmp.lt.s32.totalorder %s839_s25, %s832_s20 }
  0x20   : > { %p836_p10 = pneg %p835_p8  ;;  %p842_p1 = por %p841_p0, %p840_p12 }
  0x22   : > { %p843_p2 = pnand %p842_p1, %p836_p10 }
  0x24   : > { %846 = shalt.err (!%p843_p2)
}
  0x25   : > { %s900_s26 = smov 256   ;;  %s901_s27 = smov 16  }
  0x26   : > { %756 = dma.hbm_to_vmem [thread:$0]  (!%p984_p9), %s980_s30, 512, %s988_s5, %s990_s7, %s900_s26, %s900_s26, %s901_s27  }
  0x27   : > { %p724_p11 = scmp.ge.s32.totalorder %s897_s17, 1  ;;  %p230_p13 = scmp.lt.s32.totalorder %s897_s17, 3 }
  0x29   : > { %p231_p3 = pnand %p724_p11, %p230_p13 }
  0x2a   : > { %s236_s28 = sand.u32 (!%p231_p3), 1, %s881_s13  }
  0x2b   : > { %234 = sbr.rel (%p231_p3) target bundleno = 288 (0x120), region = 32  ;;  %s725_s29 = sshll.u32 (!%p231_p3), %s236_s28, 5 }
  0x2c   : > { %s237_s4 = scalar_lea.sflag (!%p231_p3), [#allocation4], %s236_s28  ;;  %s240_s8 = scalar_lea.vmem (!%p231_p3), [#allocation3], %s725_s29 }
  0x32   : > { %872 = dma.done.wait (%p967_p7), %s237_s4, 512  }
  0x33   : > { %874 = vsyncadd (%p967_p7), %s237_s4, 4294966784  ;;  %p293_p4 = scmp.lt.s32.totalorder %s889_s15, 1  ;;  %v902_v0 = vmov 0   ;;  %v903_v1 = vmov 0.0   ;;  %v810_v2 = vld [vmem:[%s240_s8 + $0x4] ss:$16 sps:$4 sm:$0xff]   ;;  %v503_v7 = vlaneseq }
  0x34   : > { %420 = vmatprep.mubr.bf16.mxu0 %v902_v0  ;;  %463 = vmatprep.mubr.bf16.mxu1 %v902_v0  ;;  %341 = vst [vmem:[#allocation2 + $0x20] sm:$0x3f] %v903_v1  ;;  %342 = vst [vmem:[#allocation2 + $0x28] sm:$0x3f] %v903_v1  ;;  %v812_v3 = vld [vmem:[%s240_s8 + $0xc] ss:$16 sps:$4 sm:$0xff]  }
  0x35   : > { %343 = vst [vmem:[#allocation2 + $0x30] sm:$0x3f] %v903_v1  ;;  %344 = vst [vmem:[#allocation2 + $0x38] sm:$0x3f] %v903_v1  ;;  %s1074_s15 = smov (!%p293_p4, %s889_s15), 1  ;;  %388 = vmatprep.subr.bf16.mxu0 %v810_v2  ;;  %431 = vmatprep.subr.bf16.mxu1 %v812_v3  ;;  %vm384_vm0 = vcmask 130048  }
  0x36   : > { %s745_s30 = sshll.u32 %s1074_s15, 3  ;;  %v814_v4 = vld [vmem:[%s240_s8] ss:$16 sps:$4 sm:$0xff]   ;;  %v815_v5 = vld [vmem:[%s240_s8 + $0x8] ss:$16 sps:$4 sm:$0xff]   ;;  %s728_s7 = sshll.u32 %s1074_s15, 2 }
  0x37   : > { %s303_s6 = scalar_lea.vmem %s1059_s0, %s745_s30  ;;  %389 = vmatpush1.bf16.msra.mxu0 %v814_v4  ;;  %432 = vmatpush1.bf16.msra.mxu1 %v815_v5  ;;  %v504_v8 = vshrl.u32 %v503_v7, 7  ;;  %s314_s11 = scalar_lea.vmem %s1061_s2, %s728_s7 }
  0x38   : > { %v816_v6 = vld [vmem:[%s303_s6] sm:$0x7f]   ;;  %s746_s12 = sshll.u32 %s1074_s15, 5 }
  0x39   : > { %v505_v9 = vsub.s32 0, %v504_v8  ;;  %v513_v10 = vsub.s32 2, %v504_v8  ;;  %v501_v11 = vld [vmem:[%s314_s11] sm:$0xf]  ;;  %v509_v12 = vsub.s32 1, %v504_v8  ;;  %v517_v13 = vsub.s32 3, %v504_v8  ;;  %s329_s21 = scalar_lea.vmem %s1062_s3, %s746_s12 }
  0x3a   : > { %736 = vmatmul.mubr.msk.bf16.vlgmr.msra.gmra.mrb[0].mxu0 %vm384_vm0, %v816_v6  ;;  %737 = vmatmul.mubr.msk.bf16.vlgmr.msra.gmra.mrb[0].mxu1 %vm384_vm0, %v816_v6 }
  0x3b   : > { %v506_v14 = vrot.slane %v501_v11, %v505_v9  ;;  %v514_v15 = vrot.slane %v501_v11, %v513_v10  ;;  %v510_v16 = vrot.slane %v501_v11, %v509_v12  ;;  %v518_v17 = vrot.slane %v501_v11, %v517_v13  ;;  %v349_v20 = vld [vmem:[#allocation2 + $0x20] sm:$0x3f]  ;;  %v350_v24 = vld [vmem:[#allocation2 + $0x28] sm:$0x3f] }
  0x3c   : > { %v351_v21 = vld [vmem:[#allocation2 + $0x30] sm:$0x3f]  ;;  %v352_v25 = vld [vmem:[#allocation2 + $0x38] sm:$0x3f] }
 0x10d   : > { %v422_v18 = vpop.f32.mrb[0].mxu0  ;;  %v465_v19 = vpop.f32.mrb[0].mxu1 }
 0x10e   : > { %v424_v22 = vpop.f32.mrb[1].mxu0  ;;  %v467_v23 = vpop.f32.mrb[1].mxu1  ;;  %v523_v28 = vadd.f32 %v506_v14, %v422_v18  ;;  %v525_v29 = vadd.f32 %v514_v15, %v465_v19 }
 0x10f   : > { %v426_v26 = vpop.f32.mrb[2].mxu0  ;;  %v469_v27 = vpop.f32.mrb[2].mxu1  ;;  %v524_v34 = vadd.f32 %v510_v16, %v424_v22  ;;  %v526_v35 = vadd.f32 %v518_v17, %v467_v23 }
 0x110   : > { %v478_v30 = vadd.f32 %v426_v26, %v349_v20  ;;  %v480_v31 = vadd.f32 %v469_v27, %v351_v21  ;;  %v428_v32 = vpop.f32.mrb[3].mxu0  ;;  %v471_v33 = vpop.f32.mrb[3].mxu1 }
 0x111   : > { %v479_v36 = vadd.f32 %v428_v32, %v350_v24  ;;  %v481_v37 = vadd.f32 %v471_v33, %v352_v25  ;;  %v747_v38 = vpack.c.bf16 %v524_v34, %v523_v28  ;;  %v748_v39 = vpack.c.bf16 %v526_v35, %v525_v29 }
 0x112   : > { %486 = vst [vmem:[#allocation2 + $0x20] sm:$0x3f] %v478_v30  ;;  %488 = vst [vmem:[#allocation2 + $0x30] sm:$0x3f] %v480_v31 }
 0x113   : > { %487 = vst [vmem:[#allocation2 + $0x28] sm:$0x3f] %v479_v36  ;;  %489 = vst [vmem:[#allocation2 + $0x38] sm:$0x3f] %v481_v37 }
 0x114   : > { %555 = vst [vmem:[%s329_s21] sm:$0xff] %v747_v38  ;;  %556 = vst [vmem:[%s329_s21 + $0x8] sm:$0xff] %v748_v39 }
 0x119   : > { %v497_v40 = vld [vmem:[#allocation2 + $0x20] sm:$0x3f]  ;;  %v499_v41 = vld [vmem:[#allocation2 + $0x30] sm:$0x3f] }
 0x11a   : > { %v527_v42 = vadd.f32 %v506_v14, %v497_v40  ;;  %v529_v43 = vadd.f32 %v514_v15, %v499_v41  ;;  %v498_v44 = vld [vmem:[#allocation2 + $0x28] sm:$0x3f]  ;;  %v500_v45 = vld [vmem:[#allocation2 + $0x38] sm:$0x3f] }
 0x11b   : > { %v528_v46 = vadd.f32 %v510_v16, %v498_v44  ;;  %v530_v47 = vadd.f32 %v518_v17, %v500_v45 }
 0x11d   : > { %v749_v48 = vpack.c.bf16 %v528_v46, %v527_v42  ;;  %v750_v49 = vpack.c.bf16 %v530_v47, %v529_v43 }
 0x11f   : > { %557 = vst [vmem:[%s329_s21 + $0x10] sm:$0x77] %v749_v48  ;;  %558 = vst [vmem:[%s329_s21 + $0x18] sm:$0x77] %v750_v49 }
 0x120 PF: > { %s16_s17 = sadd.s32 1, %s897_s17   ;;  %s1066_s12 = smov %s881_s13 }
 0x121   : > { %p13_p7 = scmp.ge.s32.totalorder %s16_s17, 4   ;;  %s1067_s13 = smov %s885_s14 }
 0x122   : > { %s1068_s14 = smov %s973_s24  ;;  %s1069_s15 = smov %s893_s16 }
 0x123   : > { %s1070_s16 = smov %s1072_s19  ;;  %15 = sbr.rel (!%p13_p7) target bundleno = 4 (0x4), region = 86 }
 0x12a   :  { %600 = vsyncpa [#allocation4], 1 }
 0x12b   :  { %602 = vsyncpa [#allocation4 + $0x1], 1 }

</bundles_post_ra>
